<compile_context>
chip_gen: v5e
topology: v5e:2x2
jax: 0.10.0
libtpu: 0.0.40
codegen_flags: <defaults>
</compile_context>

<pallas_src>
import jax
import jax.numpy as jnp
from jax.experimental import pallas as pl
from jax.experimental.pallas import tpu as pltpu

_EPS = 1e-12  # matches torch.nn.functional.normalize default eps


def _l2norm_ref(x):
    """Pure-JAX fallback with identical F.normalize semantics."""
    xf = x.astype(jnp.float32)
    norm = jnp.sqrt(jnp.sum(xf * xf, axis=-1, keepdims=True))
    return (xf / jnp.maximum(norm, _EPS)).astype(x.dtype)


def _l2norm_kernel(x_ref, o_ref):
    # Full row-block in VMEM; reduce along the channel (lane) axis.
    x = x_ref[...].astype(jnp.float32)
    ss = jnp.sum(x * x, axis=-1, keepdims=True)          # [rows, 1]
    denom = jnp.maximum(jnp.sqrt(ss), _EPS)              # F.normalize: max(||x||_2, eps)
    inv = pl.reciprocal(denom, approx=False)             # EUP slot; frees the VPU for the scale
    o_ref[...] = (x * inv).astype(o_ref.dtype)


def _vmem_limits():
    """(scoped vmem_limit_bytes, tile-sizing budget) per TPU generation."""
    cap = 64 * 1024 * 1024  # conservative default (v7x per-TC VMEM)
    try:
        cap = int(pltpu.get_tpu_info().vmem_capacity_bytes)
    except Exception:
        pass
    limit = min(int(cap * 0.75), 64 * 1024 * 1024)   # raise above 16/32 MiB defaults, keep headroom
    budget = min(int(cap * 0.60), 48 * 1024 * 1024)  # what tiles may actually consume (v7x-safe)
    return limit, budget


def l2norm(x, *, block_rows=None):
    """L2-normalize each row of a [B, C] array (p=2, dim=-1), PyTorch semantics."""
    assert x.ndim == 2, "The input tensor of L2Norm must be of shape [B, C]"
    B, C = x.shape
    itemsize = jnp.dtype(x.dtype).itemsize

    vmem_limit, tile_budget = _vmem_limits()

    # Lane-sparse outputs (C < 128) force masked partial stores and launch overhead
    # dominates for such tiny rows: let XLA handle that regime.
    if C < 128:
        return _l2norm_ref(x)

    # VMEM bytes one tile-row costs: in + out blocks double-buffered (input dtype)
    # plus ~2 f32 intermediates for the compute.
    bytes_per_row = C * (itemsize * 2 * 2 + 4 * 2)

    if 8 * bytes_per_row > tile_budget:
        # TODO(synk): add a second ("arbitrary") grid axis over C with a [rows, 1]
        # sum-of-squares scratch accumulator for very wide rows; XLA fallback for now.
        return _l2norm_ref(x)

    rows_padded = pl.cdiv(B, 8) * 8
    if block_rows is None:
        # Largest multiple-of-8 row tile that fits the budget.
        block_rows = max(8, min(rows_padded, (tile_budget // bytes_per_row) // 8 * 8))
        # Keep >= 2 grid steps when the batch allows it, so the parallel row axis
        # can be sharded across both TensorCores on v7x (neutral on v5e/v6e).
        if rows_padded >= 16:
            block_rows = min(block_rows, ((rows_padded // 2 + 7) // 8) * 8)
    block_rows = int(block_rows)

    grid = (pl.cdiv(B, block_rows),)

    cost = pl.CostEstimate(
        flops=3 * B * C,                       # square + reduce-add + scale
        transcendentals=2 * B,                 # sqrt + reciprocal per row
        bytes_accessed=2 * B * C * itemsize,   # read + write once each
    )

    return pl.pallas_call(
        _l2norm_kernel,
        out_shape=jax.ShapeDtypeStruct((B, C), x.dtype),
        grid_spec=pltpu.PrefetchScalarGridSpec(
            num_scalar_prefetch=0,
            grid=grid,
            in_specs=[pl.BlockSpec((block_rows, C), lambda i: (i, 0))],
            out_specs=pl.BlockSpec((block_rows, C), lambda i: (i, 0)),
        ),
        compiler_params=pltpu.CompilerParams(
            dimension_semantics=("parallel",),
            vmem_limit_bytes=int(vmem_limit),
        ),
        cost_estimate=cost,
    )(x)


if __name__ == "__main__":
    key0, key1 = jax.random.split(jax.random.PRNGKey(0))

    # Main test: lane-dense channels (multiple of 128), B not a multiple of the
    # chosen tile -> exercises the Pallas path, the multi-step parallel grid and
    # the clipped partial last block.
    B, C = 72, 256
    x = jax.random.normal(key0, (B, C), dtype=jnp.float32)
    out = jax.block_until_ready(l2norm(x))
    ref = x / jnp.maximum(jnp.linalg.norm(x, axis=-1, keepdims=True), _EPS)
    assert out.shape == (B, C)
    assert jnp.allclose(out, ref, atol=1e-6, rtol=1e-5)

    # Small-channel regime (C < 128) goes through the XLA fallback.
    x_small = jax.random.normal(key1, (8, 32), dtype=jnp.float32)
    out_small = jax.block_until_ready(l2norm(x_small))
    ref_small = x_small / jnp.maximum(
        jnp.linalg.norm(x_small, axis=-1, keepdims=True), _EPS)
    assert jnp.allclose(out_small, ref_small, atol=1e-6, rtol=1e-5)

    print("KERNEL_OK")
</pallas_src>

<mosaic_0001>
module attributes {stable_mosaic.version = 11 : i64} {
  func.func @_l2norm_kernel(%arg0: i32, %arg1: memref<40x256xf32, #tpu.memory_space<vmem>>, %arg2: memref<40x256xf32, #tpu.memory_space<vmem>>) attributes {dimension_semantics = [#tpu.dimension_semantics<parallel>], iteration_bounds = array<i64: 2>, scalar_prefetch = 0 : i64, scratch_operands = 0 : i64, tpu.core_type = #tpu.core_type<tc>, window_params = [{transform_indices = @transform_0, window_bounds = array<i64: 40, 256>}, {transform_indices = @transform_1, window_bounds = array<i64: 40, 256>}]} {
    %c0 = arith.constant 0 : index
    %c0_0 = arith.constant 0 : index
    %0 = vector.load %arg1[%c0, %c0_0] : memref<40x256xf32, #tpu.memory_space<vmem>>, vector<40x256xf32>
    %1 = arith.mulf %0, %0 : vector<40x256xf32>
    %cst = arith.constant dense<0.000000e+00> : vector<40xf32>
    %2 = vector.multi_reduction <add>, %1, %cst [1] : vector<40x256xf32> to vector<40xf32>
    %3 = vector.shape_cast %2 : vector<40xf32> to vector<40x1xf32>
    %4 = math.sqrt %3 : vector<40x1xf32>
    %cst_1 = arith.constant 9.99999996E-13 : f32
    %5 = vector.broadcast %cst_1 : f32 to vector<40x1xf32>
    %6 = arith.maximumf %4, %5 : vector<40x1xf32>
    %7 = tpu.reciprocal %6 : vector<40x1xf32> -> vector<40x1xf32>
    %8 = vector.broadcast %7 : vector<40x1xf32> to vector<40x256xf32>
    %9 = arith.mulf %0, %8 : vector<40x256xf32>
    %c0_2 = arith.constant 0 : index
    %c0_3 = arith.constant 0 : index
    %10 = vector.load %arg2[%c0_2, %c0_3] : memref<40x256xf32, #tpu.memory_space<vmem>>, vector<40x256xf32>
    tpu.vector_store %arg2[%c0_2, %c0_3], %9 {strides = array<i32>} : memref<40x256xf32, #tpu.memory_space<vmem>>, vector<40x256xf32>,
    return
  }
  func.func @transform_0(%arg0: i32) -> (i32, i32) {
    %c0_i32 = arith.constant 0 : i32
    %c0_i32_0 = arith.constant 0 : i32
    return %arg0, %c0_i32 : i32, i32
  }
  func.func @transform_1(%arg0: i32) -> (i32, i32) {
    %c0_i32 = arith.constant 0 : i32
    %c0_i32_0 = arith.constant 0 : i32
    return %arg0, %c0_i32 : i32, i32
  }
}

</mosaic_0001>

<bundles_post_ra>
// kernel: tpu_custom_call.1
= control target key start
LH: loop header
LB: loop body
LE: loop exit
PB: predicated region body
PF: predicated region fallthrough
CT: control target
= control target key end

     0   :  { %6 = vsyncpa [#allocation3], 0  ;;  %s963_s0 = inlined_call_operand.hbm [shape: f32[72,256], index: 0, kind: input, shape index: {}]   ;;  %s964_s1 = inlined_call_operand.hbm [shape: f32[72,256], index: 1, kind: output, shape index: {}]  }
   0x1   :  { %8 = vsyncpa [#allocation3 + $0x1], 0 }
   0x2   :  { %9 = vsyncpa [#allocation4], 0 }
   0x3   :  { %11 = vsyncpa [#allocation4 + $0x1], 0  ;;  %s673_s6 = smov 0   ;;  %s675_s7 = smov 0  }
   0x4   :  { %s677_s8 = smov 0   ;;  %s679_s9 = smov 0  }
   0x5 LB: > { %s694_s10 = sadd.s32 4294967295, %s655_s9   ;;  %s446_s11 = sadd.s32 4294967294, %s655_s9   ;;  %s655_s9 = sphi %s679_s9, %s977_s9   ;;  %s651_s8 = sphi %s677_s8, %s976_s8   ;;  %s647_s7 = sphi %s675_s7, %s975_s7   ;;  %s643_s6 = sphi %s673_s6, %s974_s6  }
   0x6   : > { %s698_s12 = sadd.s32 1, %s655_s9   ;;  %s24_s13 = sadd.s32 1, %s651_s8 }
   0x7   : > { %s21_s14 = ssub.s32 %s655_s9, %s698_s12  ;;  %p31_p0 = scmp.ne.s32.totalorder %s651_s8, %s647_s7 }
   0x8   : > { %p22_p1 = scmp.eq.s32.totalorder %s21_s14, 0  ;;  %p32_p2 = scmp.eq.s32.totalorder %s655_s9, 0 }
   0x9   : > { %p37_p3 = scmp.ne.s32.totalorder %s647_s7, %s643_s6  ;;  %p38_p4 = scmp.eq.s32.totalorder %s694_s10, 0 }
   0xa   : > { %s710_s15 = scalar_select %p22_p1, %s651_s8, %s24_s13  }
   0xb   : > { %p33_p5 = por %p32_p2, %p31_p0  ;;  %p712_p6 = por %p38_p4, %p37_p3 }
   0xc   : > { %p61_p7 = scmp.eq.s32.totalorder %s694_s10, 1  ;;  %p67_p8 = scmp.eq.s32.totalorder %s446_s11, 1 }
   0xd   : > { %p965_p11 = scmp.ge.s32.totalorder %s655_s9, 2 }
   0xe   : > { %p717_p9 = por %p61_p7, %p31_p0  ;;  %p721_p10 = por %p67_p8, %p37_p3 }
   0xf   : > { %83 = sbr.rel (%p965_p11) target bundleno = 58 (0x3a), region = 16 }
  0x14   : > { %86 = sbr.rel (!%p33_p5) target bundleno = 58 (0x3a), region = 20  ;;  %s87_s19 = sand.u32 (%p33_p5), 1, %s651_s8  }
  0x15   : > { %s92_s20 = smul.u32 (%p33_p5), 5, %s655_s9  ;;  %s733_s26 = scalar_lea.sflag (%p33_p5), [#allocation3], %s87_s19 }
  0x16   : > { %s474_s21 = smul.u32 (%p33_p5), 80, %s87_s19 }
  0x17   : > { %s93_s22 = ssub.s32 (%p33_p5), 9, %s92_s20 }
  0x18   : > { %p94_p12 = scmp.lt.s32.totalorder (%p33_p5), %s93_s22, 5  ;;  %s91_s27 = scalar_lea.vmem (%p33_p5), [#allocation2], %s474_s21 }
  0x1a   : > { %s979_s22 = smov (!%p94_p12, %s93_s22), 5 }
  0x1b   : > { %s466_s23 = sshll.u32 %s979_s22, 4 }
  0x1c   : > { %s98_s24 = ssub.s32 80, %s466_s23 }
  0x1d   : > { %s99_s25 = sshll.u32 %s98_s24, 4 }
  0x1e   : > { %100 = vsyncadd %s733_s26, %s99_s25  ;;  %p736_p13 = scmp.ne.s32.totalorder %s466_s23, 0  ;;  %s472_s29 = smul.u32 80, %s655_s9 }
  0x1f   : > { %s741_s30 = sshll.u32 %s91_s27, 4  ;;  %s455_s2 = sshll.u32 %s979_s22, 8  ;;  %s109_s30 = int_to_ptr.vmem [resolvable:$true] %s741_s30 }
  0x20   : > { %s104_s5 = scalar_lea.hbm %s963_s0, %s472_s29  ;;  %s541_s14 = sshrl.u32 %s455_s2, 4 }
  0x21   : > { %s106_s11 = sshll.u32 %s104_s5, 4  ;;  %s550_s23 = scalar_lea.hbm %s963_s0, 144  ;;  %s748_s11 = int_to_ptr.hbm [resolvable:$true] %s106_s11 }
  0x22   : > { %s539_s13 = sshra.s32 %s748_s11, 4  ;;  %s540_s13 = int_to_ptr.hbm [resolvable:$true] %s539_s13 }
  0x23   : > { %s546_s19 = scalar_lea.hbm %s540_s13, %s541_s14  ;;  %p551_p3 = scmp.lt.s32.totalorder %s540_s13, %s963_s0 }
  0x24   : > { %p547_p0 = scmp.ne.s32.totalorder %s540_s13, %s546_s19  ;;  %p552_p4 = scmp.lt.s32.totalorder %s550_s23, %s546_s19 }
  0x26   : > { %p548_p1 = pnand %p547_p0, %p736_p13  ;;  %p553_p5 = por %p552_p4, %p551_p3 }
  0x28   : > { %p549_p2 = pneg %p548_p1 }
  0x2a   : > { %p554_p7 = pnand %p553_p5, %p549_p2 }
  0x2c   : > { %557 = shalt.err (!%p554_p7)
}
  0x2d   : > { %s558_s27 = sshra.s32 %s109_s30, 4  ;;  %s657_s3 = smov [#allocation2]   ;;  %s559_s27 = int_to_ptr.vmem [resolvable:$true] %s558_s27 }
  0x2e   : > { %s565_s29 = scalar_lea.vmem %s559_s27, %s541_s14  ;;  %s569_s4 = scalar_lea.vmem %s657_s3, 160 }
  0x2f   : > { %p566_p8 = scmp.ne.s32.totalorder %s559_s27, %s565_s29  ;;  %p571_p1 = scmp.lt.s32.totalorder %s569_s4, %s565_s29 }
  0x31   : > { %p567_p12 = pnand %p566_p8, %p736_p13 }
  0x33   : > { %p568_p0 = pneg %p567_p12 }
  0x35   : > { %p573_p11 = pnand %p571_p1, %p568_p0 }
  0x37   : > { %576 = shalt.err (!%p573_p11)
}
  0x38   : > { %s658_s5 = smov 256   ;;  %s659_s13 = smov 16  }
  0x39   : > { %114 = dma.hbm_to_vmem [thread:$0]  (%p736_p13), %s748_s11, %s455_s2, %s109_s30, %s733_s26, %s658_s5, %s658_s5, %s659_s13  }
  0x3a PF: > { %p456_p2 = scmp.ge.s32.totalorder %s655_s9, 1  ;;  %p116_p3 = scmp.lt.s32.totalorder %s655_s9, 3 }
  0x3c   : > { %p117_p4 = pnand %p456_p2, %p116_p3 }
  0x3d   : > { %s776_s14 = sand.u32 (!%p117_p4), 1, %s647_s7  }
  0x3e   : > { %120 = sbr.rel (%p117_p4) target bundleno = 276 (0x114), region = 24  ;;  %s123_s28 = scalar_lea.sflag (!%p117_p4), [#allocation3], %s776_s14 }
  0x3f   : > { %s475_s19 = smul.u32 (!%p117_p4), 80, %s776_s14 }
  0x41   : > { %s126_s22 = scalar_lea.vmem (!%p117_p4), [#allocation2], %s475_s19 }
  0x43   : > { %634 = dma.done.wait (%p712_p6), %s123_s28, 1280  }
  0x44   : > { %636 = vsyncadd (%p712_p6), %s123_s28, 4294966016  ;;  %v786_v0 = vld [vmem:[%s126_s22 + $0x40] sm:$0xff]  ;;  %v788_v1 = vld [vmem:[%s126_s22 + $0x48] sm:$0xff]  ;;  %s875_s16 = scalar_lea.vmem [#allocation5], %s475_s19  ;;  %s349_s26 = scalar_lea.sflag [#allocation4], %s776_s14 }
  0x45   : > { %v790_v2 = vld [vmem:[%s126_s22 + $0x20] sm:$0xff]  ;;  %v176_v3 = vmul.f32 %v786_v0, %v786_v0  ;;  %v177_v4 = vmul.f32 %v788_v1, %v788_v1  ;;  %v796_v5 = vld [vmem:[%s126_s22 + $0x28] sm:$0xff]  ;;  %v810_v12 = vld [vmem:[%s126_s22 + $0x30] sm:$0xff]  ;;  %s356_s30 = smul.u32 (%p717_p9), 5, %s694_s10 }
  0x46   : > { %v172_v6 = vmul.f32 %v790_v2, %v790_v2  ;;  %v800_v7 = vld [vmem:[%s126_s22] sm:$0xff]  ;;  %v802_v8 = vld [vmem:[%s126_s22 + $0x8] sm:$0xff]  ;;  %v173_v9 = vmul.f32 %v796_v5, %v796_v5  ;;  %v812_v14 = vld [vmem:[%s126_s22 + $0x38] sm:$0xff]  ;;  %v174_v19 = vmul.f32 %v810_v12, %v810_v12 }
  0x47   : > { %v168_v10 = vmul.f32 %v800_v7, %v800_v7  ;;  %v169_v11 = vmul.f32 %v802_v8, %v802_v8  ;;  %v190_v13 = vadd.f32 %v177_v4, %v176_v3  ;;  %v814_v15 = vld [vmem:[%s126_s22 + $0x10] sm:$0xff]  ;;  %v816_v16 = vld [vmem:[%s126_s22 + $0x18] sm:$0xff]  ;;  %v175_v20 = vmul.f32 %v812_v14, %v812_v14  ;;  %s357_s2 = ssub.s32 (%p717_p9), 9, %s356_s30 }
  0x48   : > { %v184_v17 = vadd.f32 %v173_v9, %v172_v6  ;;  %v170_v21 = vmul.f32 %v814_v15, %v814_v15  ;;  %v171_v22 = vmul.f32 %v816_v16, %v816_v16  ;;  %p358_p6 = scmp.lt.s32.totalorder (%p717_p9), %s357_s2, 5 }
  0x49   : > { %v178_v18 = vadd.f32 %v169_v11, %v168_v10  ;;  %191 = vadd.xlane.f32.xlu2 %v190_v13  ;;  %v187_v23 = vadd.f32 %v175_v20, %v174_v19 }
  0x4a   : > { %185 = vadd.xlane.f32.xlu1 %v184_v17  ;;  %v181_v24 = vadd.f32 %v171_v22, %v170_v21 }
  0x4b   : > { %179 = vadd.xlane.f32.xlu0 %v178_v18 }
  0x52   : > { %188 = vadd.xlane.f32.xlu1 %v187_v23 }
  0x53   : > { %182 = vadd.xlane.f32.xlu0 %v181_v24 }
  0xbc   : > { %v192_v25 = vpop.xlane.xlu2 %191 }
  0xbd   : > { %519 = vrsqrt.f32 %v192_v25  ;;  %v186_v26 = vpop.xlane.xlu1 %185  ;;  %vm248_vm0 = vcmp.eq.f32.partialorder %v192_v25, inf  ;;  %vm250_vm1 = vcmp.eq.f32.partialorder %v192_v25, 0.0  ;;  %v251_v48 = vand.u32 2147483648, %v192_v25 }
  0xbe   : > { %v180_v27 = vpop.xlane.xlu0 %179  ;;  %521 = vrsqrt.f32 %v186_v26  ;;  %vm224_vm2 = vcmp.eq.f32.partialorder %v186_v26, inf  ;;  %vm226_vm3 = vcmp.eq.f32.partialorder %v186_v26, 0.0  ;;  %v227_v55 = vand.u32 2147483648, %v186_v26 }
  0xbf   : > { %523 = vrsqrt.f32 %v180_v27  ;;  %vm200_vm4 = vcmp.eq.f32.partialorder %v180_v27, inf  ;;  %v203_v62 = vand.u32 2147483648, %v180_v27  ;;  %vm202_vm5 = vcmp.eq.f32.partialorder %v180_v27, 0.0 }
  0xc3   : > { %v520_v28 = vpop.eup %519 }
  0xc4   : > { %v522_v29 = vpop.eup %521  ;;  %v242_v30 = vmul.f32 %v520_v28, %v192_v25 }
  0xc5   : > { %v524_v31 = vpop.eup %523  ;;  %v218_v32 = vmul.f32 %v522_v29, %v186_v26  ;;  %v826_v33 = vpop.xlane.xlu1 %188 }
  0xc6   : > { %v828_v34 = vpop.xlane.xlu0 %182  ;;  %v243_v35 = vmul.f32 %v520_v28, %v242_v30  ;;  %v194_v36 = vmul.f32 %v524_v31, %v180_v27  ;;  %525 = vrsqrt.f32 %v826_v33  ;;  %vm236_vm6 = vcmp.eq.f32.partialorder %v826_v33, inf }
  0xc7   : > { %v219_v37 = vmul.f32 %v522_v29, %v218_v32  ;;  %527 = vrsqrt.f32 %v828_v34  ;;  %vm238_vm7 = vcmp.eq.f32.partialorder %v826_v33, 0.0  ;;  %v239_v23 = vand.u32 2147483648, %v826_v33 }
  0xc8   : > { %v244_v38 = vmul.f32 0.5, %v243_v35  ;;  %v195_v39 = vmul.f32 %v524_v31, %v194_v36  ;;  %vm212_vm8 = vcmp.eq.f32.partialorder %v828_v34, inf  ;;  %vm214_vm9 = vcmp.eq.f32.partialorder %v828_v34, 0.0 }
  0xc9   : > { %v220_v40 = vmul.f32 0.5, %v219_v37 }
  0xca   : > { %v245_v41 = vsub.f32 1.5, %v244_v38  ;;  %v196_v42 = vmul.f32 0.5, %v195_v39 }
  0xcb   : > { %v221_v43 = vsub.f32 1.5, %v220_v40 }
  0xcc   : > { %v526_v44 = vpop.eup %525  ;;  %v246_v45 = vmul.f32 %v520_v28, %v245_v41  ;;  %v197_v46 = vsub.f32 1.5, %v196_v42  ;;  %v215_v28 = vand.u32 2147483648, %v828_v34 }
  0xcd   : > { %v528_v47 = vpop.eup %527  ;;  %v222_v49 = vmul.f32 %v522_v29, %v221_v43  ;;  %v230_v50 = vmul.f32 %v526_v44, %v826_v33 }
  0xce   : > { %v247_v51 = vmul.f32 %v246_v45, %v192_v25  ;;  %v198_v52 = vmul.f32 %v524_v31, %v197_v46  ;;  %v206_v53 = vmul.f32 %v528_v47, %v828_v34 }
  0xcf   : > { %v223_v54 = vmul.f32 %v222_v49, %v186_v26  ;;  %v231_v56 = vmul.f32 %v526_v44, %v230_v50 }
  0xd0   : > { %v249_v57 = vsel %vm248_vm0, %v192_v25, %v247_v51  ;;  %v199_v58 = vmul.f32 %v198_v52, %v180_v27  ;;  %v207_v59 = vmul.f32 %v528_v47, %v206_v53 }
  0xd1   : > { %v252_v60 = vsel %vm250_vm1, %v251_v48, %v249_v57  ;;  %v225_v61 = vsel %vm224_vm2, %v186_v26, %v223_v54  ;;  %v232_v63 = vmul.f32 0.5, %v231_v56 }
  0xd2   : > { %v257_v3 = vmax.f32 %v252_v60, 1e-12  ;;  %v228_v4 = vsel %vm226_vm3, %v227_v55, %v225_v61  ;;  %v201_v6 = vsel %vm200_vm4, %v180_v27, %v199_v58  ;;  %v208_v13 = vmul.f32 0.5, %v207_v59 }
  0xd3   : > { %v255_v9 = vmax.f32 %v228_v4, 1e-12  ;;  %v204_v10 = vsel %vm202_vm5, %v203_v62, %v201_v6  ;;  %v233_v11 = vsub.f32 1.5, %v232_v63 }
  0xd4   : > { %529 = vrcp.f32 %v257_v3  ;;  %v835_v17 = vmax.f32 %v204_v10, 1e-12  ;;  %v209_v19 = vsub.f32 1.5, %v208_v13  ;;  %vm319_vm10 = vweird.f32 %v257_v3 }
  0xd5   : > { %531 = vrcp.f32 %v255_v9  ;;  %v234_v18 = vmul.f32 %v526_v44, %v233_v11  ;;  %v323_v29 = vand.u32 2147483647, %v257_v3  ;;  %v325_v35 = vand.u32 2147483648, %v257_v3 }
  0xd6   : > { %533 = vrcp.f32 %v835_v17  ;;  %v210_v21 = vmul.f32 %v528_v47, %v209_v19  ;;  %vm291_vm11 = vweird.f32 %v255_v9  ;;  %v297_v40 = vand.u32 2147483648, %v255_v9 }
  0xd7   : > { %v235_v20 = vmul.f32 %v234_v18, %v826_v33  ;;  %vm854_vm13 = vcmp.eq.f32.partialorder %v323_v29, 8.507059e+37  ;;  %v295_v45 = vand.u32 2147483647, %v255_v9  ;;  %v326_v47 = vor.u32 1.1754944e-38, %v325_v35 }
  0xd8   : > { %v211_v27 = vmul.f32 %v210_v21, %v828_v34  ;;  %v298_v50 = vor.u32 1.1754944e-38, %v297_v40  ;;  %v267_v51 = vand.u32 2147483647, %v835_v17  ;;  %v269_v52 = vand.u32 2147483648, %v835_v17 }
  0xd9   : > { %v237_v26 = vsel %vm236_vm6, %v826_v33, %v235_v20  ;;  %vm296_vm2 = vcmp.eq.f32.partialorder %v295_v45, 8.507059e+37  ;;  %vm263_vm3 = vweird.f32 %v835_v17 }
  0xda   : > { %v530_v22 = vpop.eup %529  ;;  %v240_v31 = vsel %vm238_vm7, %v239_v23, %v237_v26  ;;  %v213_v37 = vsel %vm212_vm8, %v828_v34, %v211_v27  ;;  %vm268_vm5 = vcmp.eq.f32.partialorder %v267_v51, 8.507059e+37 }
  0xdb   : > { %v532_v24 = vpop.eup %531  ;;  %v315_v25 = vmul.f32 %v530_v22, %v257_v3  ;;  %v847_v36 = vmax.f32 %v240_v31, 1e-12  ;;  %v216_v33 = vsel %vm214_vm9, %v215_v28, %v213_v37  ;;  %vm320_vm12 = vweird.f32 %v530_v22 }
  0xdc   : > { %v287_v30 = vmul.f32 %v532_v24, %v255_v9  ;;  %v534_v38 = vpop.eup %533  ;;  %vm292_vm14 = vweird.f32 %v532_v24  ;;  %v858_v49 = vmax.f32 %v216_v33, 1e-12  ;;  %vm321_vm15 = vmor %vm319_vm10, %vm320_vm12  ;;  %v270_v3 = vor.u32 1.1754944e-38, %v269_v52 }
  0xdd   : > { %v316_v32 = vsub.f32 1.0, %v315_v25  ;;  %v259_v42 = vmul.f32 %v534_v38, %v835_v17  ;;  %535 = vrcp.f32 %v847_v36  ;;  %vm293_vm0 = vmor %vm291_vm11, %vm292_vm14  ;;  %vm264_vm1 = vweird.f32 %v534_v38 }
  0xde   : > { %v288_v39 = vsub.f32 1.0, %v287_v30  ;;  %537 = vrcp.f32 %v858_v49  ;;  %vm265_vm4 = vmor %vm263_vm3, %vm264_vm1  ;;  %v309_v10 = vand.u32 2147483647, %v847_v36  ;;  %v311_v11 = vand.u32 2147483648, %v847_v36 }
  0xdf   : > { %v317_v41 = vmul.f32 %v530_v22, %v316_v32  ;;  %v260_v48 = vsub.f32 1.0, %v259_v42  ;;  %vm305_vm7 = vweird.f32 %v847_v36  ;;  %vm277_vm11 = vweird.f32 %v858_v49 }
  0xe0   : > { %v289_v44 = vmul.f32 %v532_v24, %v288_v39  ;;  %vm310_vm9 = vcmp.eq.f32.partialorder %v309_v10, 8.507059e+37 }
  0xe1   : > { %v318_v46 = vadd.f32 %v530_v22, %v317_v41  ;;  %v261_v54 = vmul.f32 %v534_v38, %v260_v48 }
  0xe2   : > { %v290_v34 = vadd.f32 %v532_v24, %v289_v44 }
  0xe3   : > { %v322_v53 = vsel %vm321_vm15, %v530_v22, %v318_v46  ;;  %v536_v57 = vpop.eup %535  ;;  %v262_v61 = vadd.f32 %v534_v38, %v261_v54  ;;  %v281_v22 = vand.u32 2147483647, %v858_v49 }
  0xe4   : > { %v327_v55 = vsel %vm854_vm13, %v326_v47, %v322_v53  ;;  %v294_v56 = vsel %vm293_vm0, %v532_v24, %v290_v34  ;;  %v301_v4 = vmul.f32 %v536_v57, %v847_v36  ;;  %vm306_vm6 = vweird.f32 %v536_v57 }
  0xe5   : > { %v336_v58 = vmul.f32 %v327_v55, %v786_v0  ;;  %v337_v59 = vmul.f32 %v327_v55, %v788_v1  ;;  %v299_v60 = vsel %vm296_vm2, %v298_v50, %v294_v56  ;;  %v266_v0 = vsel %vm265_vm4, %v534_v38, %v262_v61  ;;  %vm307_vm8 = vmor %vm305_vm7, %vm306_vm6 }
  0xe6   : > { %v332_v62 = vmul.f32 %v299_v60, %v790_v2  ;;  %v333_v63 = vmul.f32 %v299_v60, %v796_v5  ;;  %v271_v1 = vsel %vm268_vm5, %v270_v3, %v266_v0  ;;  %v302_v2 = vsub.f32 1.0, %v301_v4  ;;  %v538_v5 = vpop.eup %537 }
  0xe7   : > { %346 = vst [vmem:[%s875_s16 + $0x40] sm:$0xff] %v336_v58  ;;  %v328_v6 = vmul.f32 %v271_v1, %v800_v7  ;;  %v329_v9 = vmul.f32 %v271_v1, %v802_v8  ;;  %v273_v17 = vmul.f32 %v538_v5, %v858_v49  ;;  %v312_v7 = vor.u32 1.1754944e-38, %v311_v11 }
  0xe8   : > { %347 = vst [vmem:[%s875_s16 + $0x48] sm:$0xff] %v337_v59  ;;  %v303_v13 = vmul.f32 %v536_v57, %v302_v2  ;;  %v283_v8 = vand.u32 2147483648, %v858_v49  ;;  %vm278_vm10 = vweird.f32 %v538_v5  ;;  %vm282_vm13 = vcmp.eq.f32.partialorder %v281_v22, 8.507059e+37 }
  0xe9   : > { %342 = vst [vmem:[%s875_s16 + $0x20] sm:$0xff] %v332_v62  ;;  %v274_v19 = vsub.f32 1.0, %v273_v17  ;;  %vm279_vm12 = vmor %vm277_vm11, %vm278_vm10 }
  0xea   : > { %343 = vst [vmem:[%s875_s16 + $0x28] sm:$0xff] %v333_v63  ;;  %v304_v18 = vadd.f32 %v536_v57, %v303_v13  ;;  %v284_v27 = vor.u32 1.1754944e-38, %v283_v8 }
  0xeb   : > { %338 = vst [vmem:[%s875_s16] sm:$0xff] %v328_v6  ;;  %v275_v21 = vmul.f32 %v538_v5, %v274_v19 }
  0xec   : > { %339 = vst [vmem:[%s875_s16 + $0x8] sm:$0xff] %v329_v9  ;;  %v308_v20 = vsel %vm307_vm8, %v536_v57, %v304_v18 }
  0xed   : > { %v313_v23 = vsel %vm310_vm9, %v312_v7, %v308_v20  ;;  %v276_v26 = vadd.f32 %v538_v5, %v275_v21 }
  0xee   : > { %v334_v24 = vmul.f32 %v313_v23, %v810_v12  ;;  %v335_v25 = vmul.f32 %v313_v23, %v812_v14 }
  0xef   : > { %v280_v28 = vsel %vm279_vm12, %v538_v5, %v276_v26 }
  0xf0   : > { %344 = vst [vmem:[%s875_s16 + $0x30] sm:$0xff] %v334_v24  ;;  %v285_v29 = vsel %vm282_vm13, %v284_v27, %v280_v28  ;;  %355 = sbr.rel (!%p717_p9) target bundleno = 276 (0x114), region = 32 }
  0xf1   : > { %345 = vst [vmem:[%s875_s16 + $0x38] sm:$0xff] %v335_v25  ;;  %v330_v30 = vmul.f32 %v285_v29, %v814_v15  ;;  %v331_v31 = vmul.f32 %v285_v29, %v816_v16 }
  0xf3   : > { %340 = vst [vmem:[%s875_s16 + $0x10] sm:$0xff] %v330_v30 }
  0xf4   : > { %341 = vst [vmem:[%s875_s16 + $0x18] sm:$0xff] %v331_v31 }
  0xf5   : > { %s981_s2 = smov (!%p358_p6, %s357_s2), 5 }
  0xf6   : > { %s469_s11 = sshll.u32 %s981_s2, 4 }
  0xf7   : > { %s362_s20 = ssub.s32 80, %s469_s11 }
  0xf8   : > { %s363_s21 = sshll.u32 %s362_s20, 4 }
  0xf9   : > { %364 = vsyncadd %s349_s26, %s363_s21  ;;  %p909_p11 = scmp.ne.s32.totalorder %s469_s11, 0  ;;  %s473_s23 = smul.u32 80, %s694_s10 }
  0xfa   : > { %s370_s24 = sshll.u32 %s875_s16, 4  ;;  %s463_s25 = sshll.u32 %s981_s2, 8  ;;  %s919_s24 = int_to_ptr.vmem [resolvable:$true] %s370_s24 }
  0xfb   : > { %s368_s3 = scalar_lea.hbm %s964_s1, %s473_s23  ;;  %s578_s5 = sshra.s32 %s919_s24, 4  ;;  %s579_s5 = int_to_ptr.vmem [resolvable:$true] %s578_s5 }
  0xfc   : > { %s372_s4 = sshll.u32 %s368_s3, 4  ;;  %s580_s13 = sshrl.u32 %s463_s25, 4  ;;  %s921_s4 = int_to_ptr.hbm [resolvable:$true] %s372_s4 }
  0xfd   : > { %s585_s19 = scalar_lea.vmem %s579_s5, %s580_s13  ;;  %s660_s10 = smov [#allocation5]  }
  0xfe   : > { %p586_p9 = scmp.ne.s32.totalorder %s579_s5, %s585_s19  ;;  %s589_s28 = scalar_lea.vmem %s660_s10, 160 }
  0xff   : > { %p591_p7 = scmp.lt.s32.totalorder %s589_s28, %s585_s19 }
 0x100   : > { %p587_p13 = pnand %p586_p9, %p909_p11 }
 0x102   : > { %p588_p5 = pneg %p587_p13 }
 0x104   : > { %p593_p8 = pnand %p591_p7, %p588_p5 }
 0x106   : > { %596 = shalt.err (!%p593_p8)
}
 0x107   : > { %s597_s22 = sshra.s32 %s921_s4, 4  ;;  %s608_s20 = scalar_lea.hbm %s964_s1, 144  ;;  %s598_s22 = int_to_ptr.hbm [resolvable:$true] %s597_s22 }
 0x108   : > { %s604_s16 = scalar_lea.hbm %s598_s22, %s580_s13  ;;  %p609_p2 = scmp.lt.s32.totalorder %s598_s22, %s964_s1 }
 0x109   : > { %p605_p12 = scmp.ne.s32.totalorder %s598_s22, %s604_s16  ;;  %p610_p3 = scmp.lt.s32.totalorder %s608_s20, %s604_s16 }
 0x10b   : > { %p606_p0 = pnand %p605_p12, %p909_p11  ;;  %p611_p4 = por %p610_p3, %p609_p2 }
 0x10d   : > { %p607_p1 = pneg %p606_p0 }
 0x10f   : > { %p612_p6 = pnand %p611_p4, %p607_p1 }
 0x111   : > { %615 = shalt.err (!%p612_p6)
}
 0x112   : > { %s661_s27 = smov 256   ;;  %s662_s29 = smov 16  }
 0x113   : > { %378 = dma.vmem_to_hbm [thread:$0]  (%p909_p11), %s919_s24, %s463_s25, %s921_s4, %s349_s26, %s661_s27, %s661_s27, %s662_s29  }
 0x114 PF: > { %s387_s3 = sand.u32 1, %s643_s6   ;;  %p973_p9 = scmp.ge.s32.totalorder %s655_s9, 2 }
 0x115   : > { %s388_s5 = scalar_lea.sflag [#allocation4], %s387_s3 }
 0x116   : > { %p479_p13 = pnand %p973_p9, %p721_p10 }
 0x118   : > { %p480_p5 = pneg %p479_p13 }
 0x11a   : > { %638 = dma.done.wait (%p480_p5), %s388_s5, 1280  }
 0x11b   : > { %640 = vsyncadd (%p480_p5), %s388_s5, 4294966016  ;;  %p14_p7 = scmp.ge.s32.totalorder %s698_s12, 4   ;;  %s974_s6 = smov %s647_s7 }
 0x11c   : > { %s975_s7 = smov %s651_s8  ;;  %s976_s8 = smov %s710_s15 }
 0x11d   : > { %s977_s9 = smov %s698_s12  ;;  %16 = sbr.rel (!%p14_p7) target bundleno = 5 (0x5), region = 69 }
 0x122   :  { %394 = vsyncpa [#allocation3], 1 }
 0x123   :  { %396 = vsyncpa [#allocation3 + $0x1], 1 }
 0x124   :  { %397 = vsyncpa [#allocation4], 1 }
 0x125   :  { %399 = vsyncpa [#allocation4 + $0x1], 1 }

</bundles_post_ra>
